<compile_context>
chip_gen: v5e
topology: v5e:2x2
jax: 0.10.0
libtpu: 0.0.40
codegen_flags: <defaults>
</compile_context>

<pallas_src>
import functools
import math

import jax
import jax.numpy as jnp
from jax.experimental import pallas as pl
from jax.experimental.pallas import tpu as pltpu


# ----------------------------------------------------------------------------
# tiling helpers
# ----------------------------------------------------------------------------
def _row_tile(R, C, itemsize, target_bytes=1 << 20):
    """Pick a row-tile size (~1 MiB per input block) for a (R, C) view."""
    rows = max(8, ((target_bytes // max(1, C * itemsize)) // 8) * 8)
    if R <= rows:
        return R, 1                       # single full-array block
    return int(rows), pl.cdiv(R, rows)


def _pick_flat_shape(total, B, S, D, need_dim_period):
    """Lane-dense 2D view (R, C) of a (B,S,D) tensor, C a multiple of 128.
    If per-dim weights are used, C must also be a multiple of D so the weight
    pattern repeats exactly within a row.  Falls back to (B*S, D)."""
    for C in (1024, 512, 256, 128):
        if total % C == 0 and (not need_dim_period or C % D == 0):
            return total // C, C
    return B * S, D


def _tile_weight_row(w, D, C):
    """Expand a scalar or (1, D) weight into a (1, C) lane-dense row."""
    w = jnp.asarray(w, jnp.float32).reshape(1, -1)
    if w.shape[1] == 1:
        return jnp.broadcast_to(w, (1, C))
    assert w.shape[1] == D and C % D == 0
    return jnp.tile(w, (1, C // D))


def _as_row(w, D):
    w = jnp.asarray(w, jnp.float32).reshape(1, -1)
    if w.shape[1] != D:
        w = jnp.broadcast_to(w, (1, D))
    return w


# ----------------------------------------------------------------------------
# elementwise mixer kernels (specialised per strategy)
# ----------------------------------------------------------------------------
def _make_flat_kernel(wx: bool, wp: bool):
    """Lane-dense elementwise mix: o = (iw?) * x + (pw?) * p (no D-reduction)."""
    def kernel(*refs):
        i = 0
        x_ref = refs[i]; i += 1
        p_ref = refs[i]; i += 1
        iw_ref = pw_ref = None
        if wx:
            iw_ref = refs[i]; i += 1
        if wp:
            pw_ref = refs[i]; i += 1
        o_ref = refs[i]
        x = x_ref[...]
        p = p_ref[...]
        if wx or wp:
            x = x.astype(jnp.float32)
            p = p.astype(jnp.float32)
            if wx:
                x = x * iw_ref[...]
            if wp:
                p = p * pw_ref[...]
        o_ref[...] = (x + p).astype(o_ref.dtype)
    return kernel


def _make_row_kernel(normalize: bool, wx: bool, wp: bool, layer_norm: bool):
    """Row-wise mix with D-axis reductions (L2-normalize and/or LayerNorm)."""
    def kernel(*refs):
        i = 0
        x_ref = refs[i]; i += 1
        p_ref = refs[i]; i += 1
        iw_ref = pw_ref = g_ref = b_ref = None
        if wx:
            iw_ref = refs[i]; i += 1
        if wp:
            pw_ref = refs[i]; i += 1
        if layer_norm:
            g_ref = refs[i]; i += 1
            b_ref = refs[i]; i += 1
        o_ref = refs[i]

        x = x_ref[...].astype(jnp.float32)          # (rows, D)
        p = p_ref[...].astype(jnp.float32)
        if normalize:                               # F.normalize(p=2, dim=-1)
            # rsqrt on the EUP + multiply instead of sqrt + divide
            x = x * jax.lax.rsqrt(jnp.maximum(jnp.sum(x * x, -1, keepdims=True), 1e-24))
            p = p * jax.lax.rsqrt(jnp.maximum(jnp.sum(p * p, -1, keepdims=True), 1e-24))
        if wx:
            x = x * iw_ref[...]
        if wp:
            p = p * pw_ref[...]
        out = x + p
        if layer_norm:                              # nn.LayerNorm(D), eps=1e-5
            mu = jnp.mean(out, -1, keepdims=True)
            var = jnp.mean((out - mu) ** 2, -1, keepdims=True)
            out = (out - mu) * jax.lax.rsqrt(var + 1e-5)
            out = out * g_ref[...] + b_ref[...]
        o_ref[...] = out.astype(o_ref.dtype)
    return kernel


def _flat_mix_call(x, p, iw=None, pw=None):
    B, S, D = x.shape
    need_period = any(w is not None and jnp.asarray(w).size > 1 for w in (iw, pw))
    R, C = _pick_flat_shape(B * S * D, B, S, D, need_period)
    x2, p2 = x.reshape(R, C), p.reshape(R, C)
    tr, n = _row_tile(R, C, x.dtype.itemsize)
    blk = pl.BlockSpec((tr, C), lambda i: (i, 0))
    wrow = pl.BlockSpec((1, C), lambda i: (0, 0))
    wx, wp = iw is not None, pw is not None
    operands, in_specs = [x2, p2], [blk, blk]
    if wx:
        operands.append(_tile_weight_row(iw, D, C)); in_specs.append(wrow)
    if wp:
        operands.append(_tile_weight_row(pw, D, C)); in_specs.append(wrow)
    out2 = pl.pallas_call(
        _make_flat_kernel(wx, wp),
        out_shape=jax.ShapeDtypeStruct((R, C), x.dtype),
        grid=(n,),
        in_specs=in_specs,
        out_specs=blk,
        compiler_params=pltpu.CompilerParams(dimension_semantics=("parallel",)),
    )(*operands)
    return out2.reshape(B, S, D)


def _row_mix_call(x, p, *, normalize=False, layer_norm=False,
                  iw=None, pw=None, gamma=None, beta=None):
    B, S, D = x.shape
    R = B * S
    x2, p2 = x.reshape(R, D), p.reshape(R, D)
    tr, n = _row_tile(R, D, x.dtype.itemsize)
    blk = pl.BlockSpec((tr, D), lambda i: (i, 0))
    vec = pl.BlockSpec((1, D), lambda i: (0, 0))
    wx, wp = iw is not None, pw is not None
    operands, in_specs = [x2, p2], [blk, blk]
    if wx:
        operands.append(_as_row(iw, D)); in_specs.append(vec)
    if wp:
        operands.append(_as_row(pw, D)); in_specs.append(vec)
    if layer_norm:
        operands += [_as_row(gamma, D), _as_row(beta, D)]
        in_specs += [vec, vec]
    out2 = pl.pallas_call(
        _make_row_kernel(normalize, wx, wp, layer_norm),
        out_shape=jax.ShapeDtypeStruct((R, D), x.dtype),
        grid=(n,),
        in_specs=in_specs,
        out_specs=blk,
        compiler_params=pltpu.CompilerParams(dimension_semantics=("parallel",)),
    )(*operands)
    return out2.reshape(B, S, D)


# ----------------------------------------------------------------------------
# positional_attention: multi-head attention (q = inputs, k = v = positions)
# ----------------------------------------------------------------------------
def _mha_kernel(x_ref, p_ref, wq_ref, wk_ref, wv_ref, bq_ref, bk_ref, bv_ref,
                wo_ref, bo_ref, o_ref, *, num_heads: int, mm_dtype):
    bb, S, D = x_ref.shape
    H = num_heads
    hd = D // H
    rows = bb * S
    scale = 1.0 / math.sqrt(hd)

    x = x_ref[...]                                  # (bb, S, D), input dtype
    kv = p_ref[...]
    x2 = x.reshape(rows, D).astype(mm_dtype)        # big M for projections
    kv2 = kv.reshape(rows, D).astype(mm_dtype)
    dn = (((1,), (1,)), ((), ()))                   # contract vs W's in-features
                                                    # (PyTorch (out,in) layout, no .T)
    out = jnp.zeros((rows, D), jnp.float32)
    # Static unroll over heads. Weights arrive pre-split per head on a leading
    # axis, so there is no in-kernel lane slicing and no concatenate: the
    # output projection is accumulated per head instead.
    for h in range(H):
        q = jax.lax.dot_general(x2, wq_ref[h], dn,
                                preferred_element_type=jnp.float32) + bq_ref[h]
        k = jax.lax.dot_general(kv2, wk_ref[h], dn,
                                preferred_element_type=jnp.float32) + bk_ref[h]
        v = jax.lax.dot_general(kv2, wv_ref[h], dn,
                                preferred_element_type=jnp.float32) + bv_ref[h]
        qh = q.reshape(bb, S, hd).astype(mm_dtype)
        kh = k.reshape(bb, S, hd).astype(mm_dtype)
        vh = v.reshape(bb, S, hd).astype(mm_dtype)
        s = jnp.einsum("bqd,bkd->bqk", qh, kh,
                       preferred_element_type=jnp.float32) * scale
        s = s - jnp.max(s, axis=-1, keepdims=True)
        e = jnp.exp(s)
        a = e * pl.reciprocal(jnp.sum(e, axis=-1, keepdims=True), approx=True)
        ctx = jnp.einsum("bqk,bkd->bqd", a.astype(mm_dtype), vh,
                         preferred_element_type=jnp.float32)
        out = out + jax.lax.dot_general(
            ctx.reshape(rows, hd).astype(mm_dtype), wo_ref[h], dn,
            preferred_element_type=jnp.float32)
    out = out + bo_ref[...]
    o_ref[...] = (x.astype(jnp.float32) + out.reshape(bb, S, D)).astype(o_ref.dtype)


def _choose_batch_tile(B, S, D, H):
    """Batch elements per grid step: aim for >=256 projection rows, bound VMEM."""
    bb = max(1, min(B, -(-256 // S)))
    def f32_bytes(b):
        rows = b * S
        return (2 * b * S * S + rows * (3 * (D // H) + 3 * D)) * 4
    while bb > 1 and f32_bytes(bb) > (16 << 20):
        bb -= 1
    return bb


def _mha_call(x, p, prm, *, num_heads):
    B, S, D = x.shape
    H = num_heads
    assert D % H == 0, "embed_dim must be divisible by num_heads"
    hd = D // H
    bb = _choose_batch_tile(B, S, D, H)
    mm_dtype = x.dtype                              # bf16-native MXU if caller uses bf16

    # Head-split weight layouts (one small host rearrangement per call):
    #   q/k/v: (D_out, D_in) -> (H, hd, D_in)   (rows of head h)
    #   out  : (D_out, D_in) -> (H, D_out, hd)  (input columns of head h)
    wq = prm["wq"].astype(mm_dtype).reshape(H, hd, D)
    wk = prm["wk"].astype(mm_dtype).reshape(H, hd, D)
    wv = prm["wv"].astype(mm_dtype).reshape(H, hd, D)
    wo = prm["wo"].astype(mm_dtype).reshape(D, H, hd).transpose(1, 0, 2)
    bq = prm["bq"].astype(jnp.float32).reshape(H, 1, hd)
    bk = prm["bk"].astype(jnp.float32).reshape(H, 1, hd)
    bv = prm["bv"].astype(jnp.float32).reshape(H, 1, hd)
    bo = prm["bo"].astype(jnp.float32).reshape(1, D)

    xspec = pl.BlockSpec((bb, S, D), lambda i: (i, 0, 0))
    w3 = pl.BlockSpec((H, hd, D), lambda i: (0, 0, 0))
    wo_spec = pl.BlockSpec((H, D, hd), lambda i: (0, 0, 0))
    b3 = pl.BlockSpec((H, 1, hd), lambda i: (0, 0, 0))
    bo_spec = pl.BlockSpec((1, D), lambda i: (0, 0))

    kernel = functools.partial(_mha_kernel, num_heads=H, mm_dtype=mm_dtype)
    # TODO(synk): for very long sequences (v7x 64 MiB VMEM) add a q-tile grid axis
    # with flash-style online softmax; not needed at module-typical sizes.
    return pl.pallas_call(
        kernel,
        out_shape=jax.ShapeDtypeStruct((B, S, D), x.dtype),
        grid=(pl.cdiv(B, bb),),
        in_specs=[xspec, xspec, w3, w3, w3, b3, b3, b3, wo_spec, bo_spec],
        out_specs=xspec,
        compiler_params=pltpu.CompilerParams(dimension_semantics=("parallel",)),
    )(x, p, wq, wk, wv, bq, bk, bv, wo, bo)


# ----------------------------------------------------------------------------
# EmbeddingMixer (JAX/Pallas port)
# ----------------------------------------------------------------------------
class EmbeddingMixer:
    NUM_HEADS = 8

    def __init__(self, embed_dim: int, mixer_strategy: str = "default", key=None):
        self.embed_dim = embed_dim
        self.mixer_strategy = mixer_strategy
        D = embed_dim
        key = key if key is not None else jax.random.PRNGKey(0)
        ks = jax.random.split(key, 8)

        if mixer_strategy in ("learnable_scaling_vec", "weighted_sum_vec",
                              "weighted_sum_no_norm_vec"):
            self.position_scale = 1.0 + 0.1 * jax.random.normal(ks[0], (1, D), jnp.float32)
            self.input_weight = 1.0 + 0.1 * jax.random.normal(ks[1], (1, D), jnp.float32)
            self.position_weight = 1.0 + 0.1 * jax.random.normal(ks[2], (1, D), jnp.float32)
        if mixer_strategy in ("learnable_scaling", "weighted_sum", "weighted_sum_no_norm"):
            self.position_scale = 1.0 + 0.1 * jax.random.normal(ks[0], (1,), jnp.float32)
            self.input_weight = 1.0 + 0.1 * jax.random.normal(ks[1], (1,), jnp.float32)
            self.position_weight = 1.0 + 0.1 * jax.random.normal(ks[2], (1,), jnp.float32)
        if mixer_strategy == "positional_attention":
            assert D % self.NUM_HEADS == 0, "embed_dim must be divisible by num_heads"
            self.attn_params = {
                "wq": 0.1 * jax.random.normal(ks[0], (D, D), jnp.float32),
                "wk": 0.1 * jax.random.normal(ks[1], (D, D), jnp.float32),
                "wv": 0.1 * jax.random.normal(ks[2], (D, D), jnp.float32),
                "bq": 0.05 * jax.random.normal(ks[3], (D,), jnp.float32),
                "bk": 0.05 * jax.random.normal(ks[4], (D,), jnp.float32),
                "bv": 0.05 * jax.random.normal(ks[5], (D,), jnp.float32),
                "wo": 0.1 * jax.random.normal(ks[6], (D, D), jnp.float32),
                "bo": 0.05 * jax.random.normal(ks[7], (D,), jnp.float32),
            }
        if mixer_strategy == "layer_norm":
            self.ln_gamma = 1.0 + 0.1 * jax.random.normal(ks[0], (D,), jnp.float32)
            self.ln_beta = 0.1 * jax.random.normal(ks[1], (D,), jnp.float32)

    def forward(self, inputs_embeds, position_embeds):
        s = self.mixer_strategy
        x, p = inputs_embeds, position_embeds
        if s == "default":
            return _flat_mix_call(x, p)
        if s in ("learnable_scaling", "learnable_scaling_vec"):
            return _flat_mix_call(x, p, pw=self.position_scale)
        if s in ("weighted_sum_no_norm", "weighted_sum_no_norm_vec"):
            return _flat_mix_call(x, p, iw=self.input_weight, pw=self.position_weight)
        if s == "hardcoded_normalization":
            return _row_mix_call(x, p, normalize=True)
        if s in ("weighted_sum", "weighted_sum_vec"):
            return _row_mix_call(x, p, normalize=True,
                                 iw=self.input_weight, pw=self.position_weight)
        if s == "layer_norm":
            return _row_mix_call(x, p, layer_norm=True,
                                 gamma=self.ln_gamma, beta=self.ln_beta)
        if s == "positional_attention":
            # TODO(synk): attention weights (second MHA return value) are not
            # materialized; the PyTorch module discards them anyway.
            return _mha_call(x, p, self.attn_params, num_heads=self.NUM_HEADS)
        raise ValueError(f"Unsupported mixer_strategy: {s}")

    __call__ = forward


# ----------------------------------------------------------------------------
# Pure-JAX references (correctness checking only)
# ----------------------------------------------------------------------------
def _l2norm(x):
    n = jnp.sqrt(jnp.sum(x * x, axis=-1, keepdims=True))
    return x / jnp.maximum(n, 1e-12)


def _ref_mha(x, p, prm, H):
    B, S, D = x.shape
    hd = D // H
    q = x @ prm["wq"].T + prm["bq"]
    k = p @ prm["wk"].T + prm["bk"]
    v = p @ prm["wv"].T + prm["bv"]
    split = lambda t: t.reshape(B, S, H, hd).transpose(0, 2, 1, 3)
    qh, kh, vh = split(q), split(k), split(v)
    s = jnp.einsum("bhqd,bhkd->bhqk", qh, kh) / math.sqrt(hd)
    a = jax.nn.softmax(s, axis=-1)
    o = jnp.einsum("bhqk,bhkd->bhqd", a, vh).transpose(0, 2, 1, 3).reshape(B, S, D)
    return x + (o @ prm["wo"].T + prm["bo"])


def ref_forward(m, x, p):
    s = m.mixer_strategy
    if s == "hardcoded_normalization":
        return _l2norm(x) + _l2norm(p)
    if s in ("learnable_scaling", "learnable_scaling_vec"):
        return x + m.position_scale * p
    if s in ("weighted_sum", "weighted_sum_vec"):
        return m.input_weight * _l2norm(x) + m.position_weight * _l2norm(p)
    if s in ("weighted_sum_no_norm", "weighted_sum_no_norm_vec"):
        return m.input_weight * x + m.position_weight * p
    if s == "positional_attention":
        return _ref_mha(x, p, m.attn_params, m.NUM_HEADS)
    if s == "layer_norm":
        c = x + p
        mu = c.mean(-1, keepdims=True)
        var = ((c - mu) ** 2).mean(-1, keepdims=True)
        return (c - mu) / jnp.sqrt(var + 1e-5) * m.ln_gamma + m.ln_beta
    if s == "default":
        return x + p
    raise ValueError(s)


# ----------------------------------------------------------------------------
if __name__ == "__main__":
    key = jax.random.PRNGKey(0)
    B, S, D = 2, 8, 32  # embed_dim=32 -> head_dim=4 for the 8-head attention
    kx, kp, kparam = jax.random.split(key, 3)
    inputs_embeds = jax.random.normal(kx, (B, S, D), jnp.float32)
    position_embeds = jax.random.normal(kp, (B, S, D), jnp.float32)

    strategies = [
        "hardcoded_normalization",
        "learnable_scaling", "learnable_scaling_vec",
        "weighted_sum", "weighted_sum_vec",
        "weighted_sum_no_norm", "weighted_sum_no_norm_vec",
        "positional_attention",
        "layer_norm",
        "default",
    ]

    for i, strat in enumerate(strategies):
        mixer = EmbeddingMixer(D, strat, key=jax.random.fold_in(kparam, i))
        out = mixer(inputs_embeds, position_embeds)
        out = jax.block_until_ready(out)
        ref = ref_forward(mixer, inputs_embeds, position_embeds)
        assert out.shape == (B, S, D), (strat, out.shape)
        # slightly looser tolerance for attention: approx EUP reciprocal in softmax
        tol = 2e-3 if strat == "positional_attention" else 1e-3
        assert jnp.allclose(out, ref, atol=tol, rtol=tol), (
            strat, float(jnp.max(jnp.abs(out - ref))))

    print("KERNEL_OK")
</pallas_src>

<mosaic_0001>
module attributes {stable_mosaic.version = 11 : i64} {
  func.func @kernel(%arg0: i32, %arg1: memref<16x32xf32, #tpu.memory_space<vmem>>, %arg2: memref<16x32xf32, #tpu.memory_space<vmem>>, %arg3: memref<16x32xf32, #tpu.memory_space<vmem>>) attributes {dimension_semantics = [#tpu.dimension_semantics<parallel>], iteration_bounds = array<i64: 1>, scalar_prefetch = 0 : i64, scratch_operands = 0 : i64, tpu.core_type = #tpu.core_type<tc>, window_params = [{transform_indices = @transform_0, window_bounds = array<i64: 16, 32>}, {transform_indices = @transform_1, window_bounds = array<i64: 16, 32>}, {transform_indices = @transform_2, window_bounds = array<i64: 16, 32>}]} {
    %c0 = arith.constant 0 : index
    %c0_0 = arith.constant 0 : index
    %0 = vector.load %arg1[%c0, %c0_0] : memref<16x32xf32, #tpu.memory_space<vmem>>, vector<16x32xf32>
    %c0_1 = arith.constant 0 : index
    %c0_2 = arith.constant 0 : index
    %1 = vector.load %arg2[%c0_1, %c0_2] : memref<16x32xf32, #tpu.memory_space<vmem>>, vector<16x32xf32>
    %2 = arith.mulf %0, %0 : vector<16x32xf32>
    %cst = arith.constant dense<0.000000e+00> : vector<16xf32>
    %3 = vector.multi_reduction <add>, %2, %cst [1] : vector<16x32xf32> to vector<16xf32>
    %4 = vector.shape_cast %3 : vector<16xf32> to vector<16x1xf32>
    %cst_3 = arith.constant 1.000000e-24 : f32
    %5 = vector.broadcast %cst_3 : f32 to vector<16x1xf32>
    %6 = arith.maximumf %4, %5 : vector<16x1xf32>
    %7 = math.rsqrt %6 : vector<16x1xf32>
    %8 = vector.broadcast %7 : vector<16x1xf32> to vector<16x32xf32>
    %9 = arith.mulf %0, %8 : vector<16x32xf32>
    %10 = arith.mulf %1, %1 : vector<16x32xf32>
    %cst_4 = arith.constant dense<0.000000e+00> : vector<16xf32>
    %11 = vector.multi_reduction <add>, %10, %cst_4 [1] : vector<16x32xf32> to vector<16xf32>
    %12 = vector.shape_cast %11 : vector<16xf32> to vector<16x1xf32>
    %cst_5 = arith.constant 1.000000e-24 : f32
    %13 = vector.broadcast %cst_5 : f32 to vector<16x1xf32>
    %14 = arith.maximumf %12, %13 : vector<16x1xf32>
    %15 = math.rsqrt %14 : vector<16x1xf32>
    %16 = vector.broadcast %15 : vector<16x1xf32> to vector<16x32xf32>
    %17 = arith.mulf %1, %16 : vector<16x32xf32>
    %18 = arith.addf %9, %17 : vector<16x32xf32>
    %c0_6 = arith.constant 0 : index
    %c0_7 = arith.constant 0 : index
    %19 = vector.load %arg3[%c0_6, %c0_7] : memref<16x32xf32, #tpu.memory_space<vmem>>, vector<16x32xf32>
    tpu.vector_store %arg3[%c0_6, %c0_7], %18 {strides = array<i32>} : memref<16x32xf32, #tpu.memory_space<vmem>>, vector<16x32xf32>,
    return
  }
  func.func @transform_0(%arg0: i32) -> (i32, i32) {
    %c0_i32 = arith.constant 0 : i32
    %c0_i32_0 = arith.constant 0 : i32
    return %arg0, %c0_i32 : i32, i32
  }
  func.func @transform_1(%arg0: i32) -> (i32, i32) {
    %c0_i32 = arith.constant 0 : i32
    %c0_i32_0 = arith.constant 0 : i32
    return %arg0, %c0_i32 : i32, i32
  }
  func.func @transform_2(%arg0: i32) -> (i32, i32) {
    %c0_i32 = arith.constant 0 : i32
    %c0_i32_0 = arith.constant 0 : i32
    return %arg0, %c0_i32 : i32, i32
  }
}

</mosaic_0001>

<bundles_post_ra>
// kernel: tpu_custom_call.1
= control target key start
LH: loop header
LB: loop body
LE: loop exit
PB: predicated region body
PF: predicated region fallthrough
CT: control target
= control target key end

     0   :  { %7 = vsyncpa [#allocation3], 0  ;;  %s282_s0 = inlined_call_operand.hbm [shape: f32[16,32], index: 0, kind: input, shape index: {}]   ;;  %s283_s1 = inlined_call_operand.hbm [shape: f32[16,32], index: 1, kind: input, shape index: {}]   ;;  %s284_s2 = inlined_call_operand.hbm [shape: f32[16,32], index: 2, kind: output, shape index: {}]  }
   0x1   :  { %8 = vsyncpa [#allocation6], 0 }
   0x2   :  { %9 = vsyncpa [#allocation4], 0  ;;  %s14_s11 = sshll.u32 %s282_s0, 4  ;;  %s228_s12 = smov [#allocation2]   ;;  %s15_s11 = int_to_ptr.hbm [resolvable:$true] %s14_s11 }
   0x3   :  { %s16_s13 = sshll.u32 %s228_s12, 4  ;;  %s27_s16 = sshll.u32 %s283_s1, 4  ;;  %s17_s13 = int_to_ptr.vmem [resolvable:$true] %s16_s13  ;;  %s28_s16 = int_to_ptr.hbm [resolvable:$true] %s27_s16 }
   0x4   :  { %s229_s17 = smov 128   ;;  %s230_s18 = smov 8  }
   0x5   :  { %22 = dma.hbm_to_vmem [thread:$0]  %s15_s11, 256, %s17_s13, [#allocation3], %s229_s17, %s229_s17, %s230_s18  }
   0x6   :  { %s231_s19 = smov [#allocation5]  }
   0x7   :  { %s29_s20 = sshll.u32 %s231_s19, 4  ;;  %s30_s20 = int_to_ptr.vmem [resolvable:$true] %s29_s20 }
   0x8   :  { %35 = dma.hbm_to_vmem [thread:$0]  %s28_s16, 256, %s30_s20, [#allocation6], %s229_s17, %s229_s17, %s230_s18  }
   0x9   :  { %222 = dma.done.wait [#allocation3], 256  }
   0xa   :  { %223 = vsyncadd [#allocation3], 4294967040 }
   0xb   :  { %224 = dma.done.wait [#allocation6], 256  }
   0xc   :  { %225 = vsyncadd [#allocation6], 4294967040  ;;  %v46_v0 = vld [vmem:[#allocation5] sm:$0xff]  ;;  %vm50_vm0 = vcmask 261120   ;;  %v44_v1 = vld [vmem:[#allocation2] sm:$0xff]  ;;  %s232_s0 = smov [#allocation7]  }
   0xd   :  { %v81_v2 = vmul.f32 %v46_v0, %v46_v0  ;;  %v48_v3 = vmul.f32 %v44_v1, %v44_v1  ;;  %v260_v4 = vld [vmem:[#allocation5 + $0x8] sm:$0xff]  ;;  %v262_v5 = vld [vmem:[#allocation2 + $0x8] sm:$0xff]  ;;  %s121_s1 = sshll.u32 %s232_s0, 4  ;;  %s123_s23 = sshll.u32 %s284_s2, 4  ;;  %s122_s1 = int_to_ptr.vmem [resolvable:$true] %s121_s1  ;;  %s124_s23 = int_to_ptr.hbm [resolvable:$true] %s123_s23 }
   0xe   :  { %v82_v8 = vmul.f32 %v260_v4, %v260_v4  ;;  %v49_v9 = vmul.f32 %v262_v5, %v262_v5 }
   0xf   :  { %v83_v6 = vsel %vm50_vm0, %v81_v2, 0.0  ;;  %v51_v7 = vsel %vm50_vm0, %v48_v3, 0.0 }
  0x10   :  { %84 = vadd.xlane.f32.xlu1 %v83_v6  ;;  %52 = vadd.xlane.f32.xlu0 %v51_v7  ;;  %v86_v10 = vsel %vm50_vm0, %v82_v8, 0.0  ;;  %v54_v11 = vsel %vm50_vm0, %v49_v9, 0.0 }
  0x18   :  { %87 = vadd.xlane.f32.xlu1 %v86_v10  ;;  %55 = vadd.xlane.f32.xlu0 %v54_v11 }
  0x83   :  { %v85_v12 = vpop.xlane.xlu1 %84  ;;  %v53_v13 = vpop.xlane.xlu0 %52 }
  0x84   :  { %v89_v14 = vmax.f32 %v85_v12, 1e-24  ;;  %v57_v15 = vmax.f32 %v53_v13, 1e-24 }
  0x86   :  { %142 = vrsqrt.f32 %v89_v14  ;;  %vm97_vm3 = vweird.f32 %v89_v14  ;;  %vm65_vm5 = vweird.f32 %v57_v15 }
  0x87   :  { %144 = vrsqrt.f32 %v57_v15 }
  0x8b   :  { %v88_v16 = vpop.xlane.xlu1 %87  ;;  %v56_v17 = vpop.xlane.xlu0 %55 }
  0x8c   :  { %v143_v18 = vpop.eup %142  ;;  %v90_v19 = vmax.f32 %v88_v16, 1e-24  ;;  %v58_v20 = vmax.f32 %v56_v17, 1e-24 }
  0x8d   :  { %v145_v21 = vpop.eup %144  ;;  %v92_v22 = vmul.f32 %v143_v18, %v89_v14  ;;  %vm98_vm1 = vweird.f32 %v143_v18 }
  0x8e   :  { %v60_v23 = vmul.f32 %v145_v21, %v57_v15  ;;  %146 = vrsqrt.f32 %v90_v19  ;;  %vm66_vm2 = vweird.f32 %v145_v21  ;;  %vm99_vm4 = vmor %vm97_vm3, %vm98_vm1  ;;  %vm107_vm9 = vweird.f32 %v90_v19 }
  0x8f   :  { %v93_v24 = vmul.f32 %v143_v18, %v92_v22  ;;  %148 = vrsqrt.f32 %v58_v20  ;;  %vm67_vm6 = vmor %vm65_vm5, %vm66_vm2  ;;  %vm75_vm11 = vweird.f32 %v58_v20 }
  0x90   :  { %v61_v25 = vmul.f32 %v145_v21, %v60_v23 }
  0x91   :  { %v94_v26 = vmul.f32 0.5, %v93_v24 }
  0x92   :  { %v62_v27 = vmul.f32 0.5, %v61_v25 }
  0x93   :  { %v95_v28 = vsub.f32 1.5, %v94_v26 }
  0x94   :  { %v147_v29 = vpop.eup %146  ;;  %v63_v30 = vsub.f32 1.5, %v62_v27 }
  0x95   :  { %v149_v31 = vpop.eup %148  ;;  %v96_v32 = vmul.f32 %v143_v18, %v95_v28  ;;  %v102_v33 = vmul.f32 %v147_v29, %v90_v19  ;;  %vm108_vm7 = vweird.f32 %v147_v29 }
  0x96   :  { %v64_v34 = vmul.f32 %v145_v21, %v63_v30  ;;  %v70_v35 = vmul.f32 %v149_v31, %v58_v20  ;;  %vm76_vm8 = vweird.f32 %v149_v31  ;;  %vm109_vm10 = vmor %vm107_vm9, %vm108_vm7 }
  0x97   :  { %v100_v36 = vsel %vm99_vm4, %v143_v18, %v96_v32  ;;  %v103_v37 = vmul.f32 %v147_v29, %v102_v33  ;;  %vm77_vm12 = vmor %vm75_vm11, %vm76_vm8 }
  0x98   :  { %v111_v38 = vmul.f32 %v100_v36, %v46_v0  ;;  %v68_v39 = vsel %vm67_vm6, %v145_v21, %v64_v34  ;;  %v71_v40 = vmul.f32 %v149_v31, %v70_v35 }
  0x99   :  { %v79_v41 = vmul.f32 %v68_v39, %v44_v1  ;;  %v104_v42 = vmul.f32 0.5, %v103_v37 }
  0x9a   :  { %v72_v43 = vmul.f32 0.5, %v71_v40 }
  0x9b   :  { %v105_v44 = vsub.f32 1.5, %v104_v42  ;;  %v113_v45 = vadd.f32 %v111_v38, %v79_v41 }
  0x9c   :  { %v73_v46 = vsub.f32 1.5, %v72_v43 }
  0x9d   :  { %v106_v47 = vmul.f32 %v147_v29, %v105_v44  ;;  %115 = vst.msk [vmem:[#allocation7] sm:$0xff] %vm50_vm0, %v113_v45 }
  0x9e   :  { %v74_v48 = vmul.f32 %v149_v31, %v73_v46 }
  0x9f   :  { %v110_v49 = vsel %vm109_vm10, %v147_v29, %v106_v47 }
  0xa0   :  { %v112_v50 = vmul.f32 %v110_v49, %v260_v4  ;;  %v78_v51 = vsel %vm77_vm12, %v149_v31, %v74_v48 }
  0xa1   :  { %v80_v52 = vmul.f32 %v78_v51, %v262_v5 }
  0xa3   :  { %v114_v53 = vadd.f32 %v112_v50, %v80_v52 }
  0xa5   :  { %116 = vst.msk [vmem:[#allocation7 + $0x8] sm:$0xff] %vm50_vm0, %v114_v53 }
  0xa6   :  { %129 = dma.vmem_to_hbm [thread:$0]  %s122_s1, 256, %s124_s23, [#allocation4], %s229_s17, %s229_s17, %s230_s18  }
  0xa7   :  { %226 = dma.done.wait [#allocation4], 256  }
  0xa8   :  { %227 = vsyncadd [#allocation4], 4294967040 }
  0xa9   :  { %134 = vsyncpa [#allocation3], 1 }
  0xaa   :  { %135 = vsyncpa [#allocation6], 1 }
  0xab   :  { %136 = vsyncpa [#allocation4], 1 }

</bundles_post_ra>
